<compile_context>
chip_gen: v7x
topology: tpu7x:2x2x1
jax: 0.10.0
libtpu: 0.0.40
codegen_flags: <defaults>
</compile_context>

<pallas_src>
import jax
import jax.numpy as jnp
from jax.experimental import pallas as pl
from jax.experimental.pallas import tpu as pltpu


def linear_kernel(wb_ref, x_ref, o_ref):
    # wb_ref: (2,) f32 in SMEM — [weight, bias] of the 1x1 Linear.
    # x_ref / o_ref: lane-dense (block_rows, 128) f32 VMEM tiles.
    w = wb_ref[0]
    b = wb_ref[1]
    # y = x @ W.T + b  ==  x * w + b  for a 1x1 Linear (exact same semantics).
    o_ref[...] = x_ref[...] * w + b


def _round_up(v, m):
    return ((v + m - 1) // m) * m


@jax.jit
def linear_forward(x, w, b):
    """x: (N, 1) f32, w: (1, 1) f32, b: (1,) f32 -> (N, 1) f32."""
    n, f = x.shape
    total = n * f

    # Pack scalar params into a single SMEM buffer: [w, b].
    wb = jnp.concatenate([w.reshape(-1), b.reshape(-1)]).astype(jnp.float32)

    # Lane-dense (rows, 128) f32 slab; rows padded so the grid tiles evenly.
    lanes = 128
    max_block_rows = 512              # 512x128x4B = 256 KiB/block; 4x with
                                      # double-buffered in+out = 1 MiB VMEM.
    rows_needed = _round_up(max(8, pl.cdiv(total, lanes)), 8)
    if rows_needed <= max_block_rows:
        block_rows = rows_needed
        rows = rows_needed
    else:
        block_rows = max_block_rows
        rows = _round_up(rows_needed, block_rows)

    slab_elems = rows * lanes
    x_slab = jnp.pad(x.reshape(-1), (0, slab_elems - total)).reshape(rows, lanes)

    grid = (rows // block_rows,)

    out_slab = pl.pallas_call(
        linear_kernel,
        out_shape=jax.ShapeDtypeStruct((rows, lanes), jnp.float32),
        grid=grid,
        in_specs=[
            pl.BlockSpec(memory_space=pltpu.MemorySpace.SMEM),        # [w, b]
            pl.BlockSpec((block_rows, lanes), lambda i: (i, 0)),      # x slab
        ],
        out_specs=pl.BlockSpec((block_rows, lanes), lambda i: (i, 0)),
        input_output_aliases={1: 0},   # reuse x_slab's HBM buffer for output
        compiler_params=pltpu.CompilerParams(
            dimension_semantics=("parallel",)),
        cost_estimate=pl.CostEstimate(
            flops=2 * slab_elems,
            transcendentals=0,
            bytes_accessed=2 * slab_elems * 4),
    )(wb, x_slab)

    # Slice away the padded tail and restore the (N, 1) shape.
    return out_slab.reshape(-1)[:total].reshape(n, f)


if __name__ == "__main__":
    # Deterministic parameter init (mimics nn.Linear(1, 1) shapes; PyTorch
    # default init is U(-1/sqrt(fan_in), 1/sqrt(fan_in)) with fan_in=1).
    key = jax.random.PRNGKey(0)
    kw, kb = jax.random.split(key)
    w = jax.random.uniform(kw, (1, 1), jnp.float32, minval=-1.0, maxval=1.0)
    b = jax.random.uniform(kb, (1,), jnp.float32, minval=-1.0, maxval=1.0)

    # Input matching the test script: x = torch.arange(100).unsqueeze(1)
    x = jnp.arange(100, dtype=jnp.float32).reshape(100, 1)

    out = linear_forward(x, w, b)
    jax.block_until_ready(out)

    # Reference check in plain JAX (y = x @ W.T + b).
    ref = x @ w.T + b
    assert out.shape == (100, 1)
    assert jnp.allclose(out, ref, atol=1e-6), "mismatch vs reference"

    print("KERNEL_OK")
</pallas_src>

<mosaic_0001>
module attributes {stable_mosaic.version = 11 : i64} {
  func.func @linear_kernel(%arg0: i32, %arg1: memref<2xf32, #tpu.memory_space<smem>>, %arg2: memref<8x128xf32, #tpu.memory_space<vmem>>, %arg3: memref<8x128xf32, #tpu.memory_space<vmem>>) attributes {dimension_semantics = [#tpu.dimension_semantics<parallel>], iteration_bounds = array<i64: 1>, scalar_prefetch = 0 : i64, scratch_operands = 0 : i64, tpu.core_type = #tpu.core_type<tc>, window_params = [{transform_indices = @transform_0, window_bounds = array<i64: 2>}, {transform_indices = @transform_1, window_bounds = array<i64: 8, 128>}, {transform_indices = @transform_2, window_bounds = array<i64: 8, 128>}]} {
    %c0 = arith.constant 0 : index
    %0 = memref.load %arg1[%c0] : memref<2xf32, #tpu.memory_space<smem>>
    %c1 = arith.constant 1 : index
    %1 = memref.load %arg1[%c1] : memref<2xf32, #tpu.memory_space<smem>>
    %c0_0 = arith.constant 0 : index
    %c0_1 = arith.constant 0 : index
    %2 = vector.load %arg2[%c0_0, %c0_1] : memref<8x128xf32, #tpu.memory_space<vmem>>, vector<8x128xf32>
    %3 = vector.broadcast %0 : f32 to vector<8x128xf32>
    %4 = arith.mulf %2, %3 : vector<8x128xf32>
    %5 = vector.broadcast %1 : f32 to vector<8x128xf32>
    %6 = arith.addf %4, %5 : vector<8x128xf32>
    %c0_2 = arith.constant 0 : index
    %c0_3 = arith.constant 0 : index
    %7 = vector.load %arg3[%c0_2, %c0_3] : memref<8x128xf32, #tpu.memory_space<vmem>>, vector<8x128xf32>
    tpu.vector_store %arg3[%c0_2, %c0_3], %6 {strides = array<i32>} : memref<8x128xf32, #tpu.memory_space<vmem>>, vector<8x128xf32>,
    return
  }
  func.func @transform_0(%arg0: i32) -> i32 {
    %c0_i32 = arith.constant 0 : i32
    %c0_i32_0 = arith.constant 0 : i32
    return %c0_i32 : i32
  }
  func.func @transform_1(%arg0: i32) -> (i32, i32) {
    %c0_i32 = arith.constant 0 : i32
    %c0_i32_0 = arith.constant 0 : i32
    return %arg0, %c0_i32 : i32, i32
  }
  func.func @transform_2(%arg0: i32) -> (i32, i32) {
    %c0_i32 = arith.constant 0 : i32
    %c0_i32_0 = arith.constant 0 : i32
    return %arg0, %c0_i32 : i32, i32
  }
}

</mosaic_0001>

<bundles_post_ra>
// kernel: linear_forward.1
= control target key start
LH: loop header
LB: loop body
LE: loop exit
PB: predicated region body
PF: predicated region fallthrough
CT: control target
= control target key end

     0   :  { %7 = vsyncpa [#allocation3], 0  ;;  %s78_s0 = inlined_call_operand.vmem [shape: f32[2], index: 0, kind: input, shape index: {}]   ;;  %s79_s1 = inlined_call_operand.vmem [shape: f32[8,128], index: 1, kind: input, shape index: {}, may-alias: {1,2}]   ;;  %s80_s2 = inlined_call_operand.vmem [shape: f32[8,128], index: 2, kind: output, shape index: {}, may-alias: {1,2}]  }
   0x1   :  { %s14_s11 = sshll.u32 %s78_s0, 4  ;;  %s15_s11 = int_to_ptr.vmem [resolvable:$true] %s14_s11 }
   0x2   :  { %s39_s12 = scalar_lea.vmem %s15_s11, 16  ;;  %p44_p1 = scmp.lt.s32.totalorder %s15_s11, %s15_s11 }
   0x3   :  { %p40_p0 = scmp.ne.s32.totalorder %s15_s11, %s39_s12  ;;  %p45_p2 = scmp.lt.s32.totalorder %s39_s12, %s39_s12 }
   0x5   :  { %p46_p3 = por %p45_p2, %p44_p1 }
   0x7   :  { %p47_p4 = pnand %p46_p3, %p40_p0 }
   0x9   :  { %50 = shalt.err (!%p47_p4)
}
   0xa   :  { %s53_s13 = smov [#allocation2]  }
   0xb   :  { %17 = dma.vmem_to_smem %s15_s11, 16, %s53_s13, [#allocation3]  }
   0xc   :  { %51 = dma.done.wait [#allocation3], 16  }
   0xd   :  { %52 = vsyncadd [#allocation3], 4294967280 }
   0xe   :  { %23 = sfence }
   0xf   :  { %s24_s14 = sld [smem:[#allocation2]]  ;;  %s37_s15 = sld [smem:[#allocation2 + $0x1]]  ;;  %v26_v0 = vld [vmem:[%s79_s1] sm:$0xff] }
  0x15   :  { %v27_v1 = vstv %s24_s14  ;;  %v29_v2 = vstv %s37_s15 }
  0x16   :  { %v28_v3 = vmul.f32 %v27_v1, %v26_v0 }
  0x18   :  { %v30_v4 = vadd.f32 %v29_v2, %v28_v3 }
  0x1a   :  { %31 = vst [vmem:[%s80_s2] sm:$0xff] %v30_v4 }
  0x1b   :  { %36 = vsyncpa [#allocation3], 1 }

</bundles_post_ra>
